<compile_context>
chip_gen: v7x
topology: tpu7x:2x2x1
jax: 0.10.0
libtpu: 0.0.40
codegen_flags: <defaults>
</compile_context>

<pallas_src>
import jax
import jax.numpy as jnp
from jax.experimental import pallas as pl
from jax.experimental.pallas import tpu as pltpu

BN_EPS = 1e-5
LEAKY_SLOPE = 0.2


def _round_up(v, m):
    return (v + m - 1) // m * m


def _cdiv(a, b):
    return -(-a // b)


def conv_stats_kernel(p_ref, w_ref, y_ref, stats_ref, acc_ref):
    """Pass 1: conv matmul (resident weights) -> bf16 y tile + per-channel partial stats."""
    kk = pl.program_id(1)
    tk = p_ref.shape[1]

    @pl.when(kk == 0)
    def _():
        acc_ref[...] = jnp.zeros_like(acc_ref)

    k0 = pl.multiple_of(kk * tk, tk)
    acc_ref[...] += jnp.dot(p_ref[...], w_ref[pl.ds(k0, tk), :],
                            preferred_element_type=jnp.float32)

    @pl.when(kk == pl.num_programs(1) - 1)
    def _():
        y = acc_ref[...]                                   # (tm, Cpad) f32
        y_ref[...] = y.astype(y_ref.dtype)                 # bf16 conv output tile
        s = jnp.sum(y, axis=0, keepdims=True)              # (1, Cpad)
        sq = jnp.sum(y * y, axis=0, keepdims=True)         # (1, Cpad)
        row = jax.lax.broadcasted_iota(jnp.int32, (8, y.shape[1]), 0)
        blk = jnp.where(row == 0, s, 0.0) + jnp.where(row == 1, sq, 0.0)
        stats_ref[...] = blk[None, :, :]                   # (1, 8, Cpad)


def bn_act_kernel(y_ref, ss_ref, o_ref):
    """Pass 2: elementwise BatchNorm (y*scale + shift) + LeakyReLU(0.2)."""
    z = y_ref[...].astype(jnp.float32) * ss_ref[0:1, :] + ss_ref[1:2, :]
    o_ref[...] = jnp.maximum(z, LEAKY_SLOPE * z)


def _im2col(x, kh=4, kw=4, stride=2, pad=1):
    """x: (N, C, H, W) -> patches (N*OH*OW, C*kh*kw), plus (OH, OW)."""
    n, c, h, w = x.shape
    xp = jnp.pad(x, ((0, 0), (0, 0), (pad, pad), (pad, pad)))
    hp, wp = h + 2 * pad, w + 2 * pad
    oh = (hp - kh) // stride + 1
    ow = (wp - kw) // stride + 1
    cols = []
    for ki in range(kh):
        row = []
        for kj in range(kw):
            row.append(xp[:, :, ki:ki + stride * oh:stride, kj:kj + stride * ow:stride])
        cols.append(jnp.stack(row, axis=2))          # (N, C, kw, OH, OW)
    patches = jnp.stack(cols, axis=2)                # (N, C, kh, kw, OH, OW)
    # -> (N, OH, OW, C, kh, kw) so flattened patch order matches weight (C_in, kh, kw)
    patches = jnp.transpose(patches, (0, 4, 5, 1, 2, 3))
    patches = patches.reshape(n * oh * ow, c * kh * kw)
    return patches, oh, ow


def _vmem_limit(nbytes):
    # 1.5x headroom for Mosaic internal scratch / layout padding; clamp to v7x's
    # 64 MiB physical VMEM; floor at 4 MiB so tiny shapes are never over-constrained.
    return max(min(int(nbytes * 1.5) + (2 << 20), 64 << 20), 4 << 20)


def conv_block_forward(x, w, b, gamma, beta, *, tm=512, tk=1024):
    """
    x: (N, C_in, H, W) f32; w: (C_out, C_in, 4, 4); b/gamma/beta: (C_out,)
    returns (N, C_out, OH, OW) f32 (PyTorch NCHW layout).
    Note: b is accepted for API parity but is mathematically cancelled by the
    train-mode BatchNorm mean subtraction, so it is not used in the kernels.
    """
    del b
    n, c_in, _, _ = x.shape
    c_out = w.shape[0]

    # im2col in the wrapper; cast to bf16 FIRST so the 4x-duplicated patch
    # intermediate (and the kernel's patch reads) are half-size.
    patches, oh, ow = _im2col(x.astype(jnp.bfloat16))
    m, k = patches.shape

    c_pad = _round_up(c_out, 128)                    # lane-dense channel axis
    tk_eff = min(_round_up(tk, 128), _round_up(k, 128))
    k_pad = _round_up(k, tk_eff)
    num_k = k_pad // tk_eff

    tm_eff = min(_round_up(tm, 8), _round_up(m, 8))
    num_m = _cdiv(m, tm_eff)
    if num_m > 1 and num_m % 2 == 1:
        # best-effort: even M-tile count so the "parallel" M axis balances v7x's two TCs.
        cand = _round_up(_cdiv(m, num_m + 1), 8)
        if _cdiv(m, cand) % 2 == 0:
            tm_eff = cand
            num_m = _cdiv(m, tm_eff)
    m_pad = num_m * tm_eff

    patches_p = jnp.pad(patches, ((0, m_pad - m), (0, k_pad - k)))
    w_mat = w.reshape(c_out, c_in * 16).T.astype(jnp.bfloat16)        # (K, C_out)
    w_p = jnp.pad(w_mat, ((0, k_pad - k), (0, c_pad - c_out)))

    # ---- Pass 1: conv matmul + bf16 y + per-M-tile BN partial statistics -----
    p1_vmem = (2 * tm_eff * tk_eff * 2      # patch tiles (double-buffered, bf16)
               + 2 * k_pad * c_pad * 2      # resident weights (budget 2 bufs)
               + 2 * tm_eff * c_pad * 2     # y tiles (double-buffered, bf16)
               + 2 * 8 * c_pad * 4          # stats tiles
               + tm_eff * c_pad * 4)        # f32 accumulator scratch
    y2d, stats = pl.pallas_call(
        conv_stats_kernel,
        out_shape=(jax.ShapeDtypeStruct((m_pad, c_pad), jnp.bfloat16),
                   jax.ShapeDtypeStruct((num_m, 8, c_pad), jnp.float32)),
        grid=(num_m, num_k),
        in_specs=[
            pl.BlockSpec((tm_eff, tk_eff), lambda i, kk: (i, kk)),
            pl.BlockSpec((k_pad, c_pad), lambda i, kk: (0, 0)),   # VMEM-resident weights
        ],
        out_specs=[
            pl.BlockSpec((tm_eff, c_pad), lambda i, kk: (i, 0)),
            pl.BlockSpec((1, 8, c_pad), lambda i, kk: (i, 0, 0)),
        ],
        scratch_shapes=[pltpu.VMEM((tm_eff, c_pad), jnp.float32)],
        compiler_params=pltpu.CompilerParams(
            dimension_semantics=("parallel", "arbitrary"),
            vmem_limit_bytes=_vmem_limit(p1_vmem)),
        cost_estimate=pl.CostEstimate(
            flops=2 * m_pad * k_pad * c_pad, transcendentals=0,
            bytes_accessed=(m_pad * k_pad * 2 + k_pad * c_pad * 2
                            + m_pad * c_pad * 2 + num_m * 8 * c_pad * 4)),
    )(patches_p, w_p)

    # ---- Tiny per-channel combine (f32), fold gamma into rsqrt ---------------
    sums = jnp.sum(stats[:, 0, :c_out], axis=0)
    sumsqs = jnp.sum(stats[:, 1, :c_out], axis=0)
    mean = sums / m                                          # real row count (pads are 0)
    var = jnp.maximum(sumsqs / m - mean * mean, 0.0)         # biased var; guard fp cancel
    scale = gamma * jax.lax.rsqrt(var + BN_EPS)
    shift = beta - mean * scale
    ss_p = jnp.pad(jnp.stack([scale, shift], axis=0),        # (2, Cpad): row0=scale,1=shift
                   ((0, 0), (0, c_pad - c_out)))

    # ---- Pass 2: elementwise normalize + LeakyReLU over y ---------------------
    p2_vmem = (2 * tm_eff * c_pad * 2       # y tiles (double-buffered, bf16)
               + 2 * 8 * c_pad * 4          # scale/shift (resident, sublane-padded)
               + 2 * tm_eff * c_pad * 4)    # f32 output tiles (double-buffered)
    out2d = pl.pallas_call(
        bn_act_kernel,
        out_shape=jax.ShapeDtypeStruct((m_pad, c_pad), jnp.float32),
        grid=(num_m,),
        in_specs=[
            pl.BlockSpec((tm_eff, c_pad), lambda i: (i, 0)),
            pl.BlockSpec((2, c_pad), lambda i: (0, 0)),
        ],
        out_specs=pl.BlockSpec((tm_eff, c_pad), lambda i: (i, 0)),
        compiler_params=pltpu.CompilerParams(
            dimension_semantics=("parallel",),
            vmem_limit_bytes=_vmem_limit(p2_vmem)),
        cost_estimate=pl.CostEstimate(
            flops=4 * m_pad * c_pad, transcendentals=0,
            bytes_accessed=m_pad * c_pad * 2 + 2 * c_pad * 4 + m_pad * c_pad * 4),
    )(y2d, ss_p)

    # rows are ordered (n, oh, ow) -> back to NCHW (PyTorch layout of the module).
    out = out2d[:m, :c_out].reshape(n, oh, ow, c_out)
    return jnp.transpose(out, (0, 3, 1, 2))


def _reference(x, w, b, gamma, beta):
    """Pure-JAX f32 reference of the PyTorch ConvBlock forward (train-mode BN)."""
    y = jax.lax.conv_general_dilated(
        x, w, window_strides=(2, 2), padding=((1, 1), (1, 1)),
        dimension_numbers=("NCHW", "OIHW", "NCHW"))
    y = y + b[None, :, None, None]
    mean = jnp.mean(y, axis=(0, 2, 3), keepdims=True)
    var = jnp.mean((y - mean) ** 2, axis=(0, 2, 3), keepdims=True)
    z = (y - mean) * jax.lax.rsqrt(var + BN_EPS)
    z = z * gamma[None, :, None, None] + beta[None, :, None, None]
    return jnp.where(z >= 0, z, LEAKY_SLOPE * z)


if __name__ == "__main__":
    key = jax.random.PRNGKey(0)

    def run_case(n, c_in, h, w_sp, c_out, tm, tk):
        k_x, k_w, k_b = jax.random.split(jax.random.fold_in(key, c_in), 3)
        x = jax.random.normal(k_x, (n, c_in, h, w_sp), dtype=jnp.float32)
        # Deterministic parameter init (synthetic; not a checkpoint load)
        w = jax.random.normal(k_w, (c_out, c_in, 4, 4), dtype=jnp.float32) * 0.1
        b = jax.random.normal(k_b, (c_out,), dtype=jnp.float32) * 0.1
        gamma = jnp.ones((c_out,), dtype=jnp.float32)   # BatchNorm2d default weight
        beta = jnp.zeros((c_out,), dtype=jnp.float32)   # BatchNorm2d default bias

        out = conv_block_forward(x, w, b, gamma, beta, tm=tm, tk=tk)
        jax.block_until_ready(out)
        assert out.shape == (n, c_out, h // 2, w_sp // 2), out.shape

        ref = _reference(x, w, b, gamma, beta)
        max_err = float(jnp.max(jnp.abs(out - ref)))
        assert max_err < 0.1, f"max abs error vs reference too large: {max_err}"

    # Small shape from the module spec; tm=64 -> 2 M tiles (pipelined, megacore-balanced).
    run_case(2, 4, 16, 16, 8, tm=64, tk=128)
    # Wider input channels -> K=256 with tk=128 exercises the K reduction and the
    # VMEM-resident weight slicing path (num_k=2).
    run_case(2, 16, 16, 16, 8, tm=64, tk=128)

    print("KERNEL_OK")
</pallas_src>

<mosaic_0001>
module attributes {stable_mosaic.version = 11 : i64} {
  func.func @conv_stats_kernel(%arg0: i32, %arg1: i32, %arg2: memref<64x128xbf16, #tpu.memory_space<vmem>>, %arg3: memref<128x128xbf16, #tpu.memory_space<vmem>>, %arg4: memref<64x128xbf16, #tpu.memory_space<vmem>>, %arg5: memref<1x8x128xf32, #tpu.memory_space<vmem>>, %arg6: memref<64x128xf32, #tpu.memory_space<vmem>>) attributes {dimension_semantics = [#tpu.dimension_semantics<parallel>, #tpu.dimension_semantics<arbitrary>], iteration_bounds = array<i64: 2, 1>, scalar_prefetch = 0 : i64, scratch_operands = 1 : i64, tpu.core_type = #tpu.core_type<tc>, window_params = [{transform_indices = @transform_0, window_bounds = array<i64: 64, 128>}, {pipeline_mode = #tpu.pipeline_mode<synchronous>, transform_indices = @transform_1, window_bounds = array<i64: 128, 128>}, {transform_indices = @transform_2, window_bounds = array<i64: 64, 128>}, {transform_indices = @transform_3, window_bounds = array<i64: 1, 8, 128>}]} {
    %c0_i32 = arith.constant 0 : i32
    %0 = arith.cmpi eq, %arg1, %c0_i32 : i32
    %1 = arith.extui %0 : i1 to i32
    %c0_i32_0 = arith.constant 0 : i32
    %2 = arith.cmpi ne, %1, %c0_i32_0 : i32
    scf.if %2 {
      %cst_9 = arith.constant 0.000000e+00 : f32
      %15 = vector.broadcast %cst_9 : f32 to vector<64x128xf32>
      %c0_10 = arith.constant 0 : index
      %c0_11 = arith.constant 0 : index
      %16 = vector.load %arg6[%c0_10, %c0_11] : memref<64x128xf32, #tpu.memory_space<vmem>>, vector<64x128xf32>
      tpu.vector_store %arg6[%c0_10, %c0_11], %15 {strides = array<i32>} : memref<64x128xf32, #tpu.memory_space<vmem>>, vector<64x128xf32>,
    } else {
    }
    %c128_i32 = arith.constant 128 : i32
    %3 = arith.muli %arg1, %c128_i32 : i32
    %4 = tpu.assume_multiple %3, 128 : i32
    %c0 = arith.constant 0 : index
    %c0_1 = arith.constant 0 : index
    %5 = vector.load %arg6[%c0, %c0_1] : memref<64x128xf32, #tpu.memory_space<vmem>>, vector<64x128xf32>
    %c0_2 = arith.constant 0 : index
    %c0_3 = arith.constant 0 : index
    %6 = vector.load %arg2[%c0_2, %c0_3] : memref<64x128xbf16, #tpu.memory_space<vmem>>, vector<64x128xbf16>
    %7 = arith.index_cast %4 : i32 to index
    %c0_4 = arith.constant 0 : index
    %8 = vector.load %arg3[%7, %c0_4] : memref<128x128xbf16, #tpu.memory_space<vmem>>, vector<128x128xbf16>
    %cst = arith.constant dense<0.000000e+00> : vector<64x128xf32>
    %9 = tpu.matmul %6, %8, %cst {dimension_numbers = #tpu.dot_dimension_numbers<[1], [0], [0], [1], [0, 0, 1, 1], [], []>} : vector<64x128xbf16>, vector<128x128xbf16>, vector<64x128xf32> -> vector<64x128xf32>
    %10 = arith.addf %5, %9 : vector<64x128xf32>
    %c0_5 = arith.constant 0 : index
    %c0_6 = arith.constant 0 : index
    %11 = vector.load %arg6[%c0_5, %c0_6] : memref<64x128xf32, #tpu.memory_space<vmem>>, vector<64x128xf32>
    tpu.vector_store %arg6[%c0_5, %c0_6], %10 {strides = array<i32>} : memref<64x128xf32, #tpu.memory_space<vmem>>, vector<64x128xf32>,
    %c0_i32_7 = arith.constant 0 : i32
    %12 = arith.cmpi eq, %arg1, %c0_i32_7 : i32
    %13 = arith.extui %12 : i1 to i32
    %c0_i32_8 = arith.constant 0 : i32
    %14 = arith.cmpi ne, %13, %c0_i32_8 : i32
    scf.if %14 {
      %c0_9 = arith.constant 0 : index
      %c0_10 = arith.constant 0 : index
      %15 = vector.load %arg6[%c0_9, %c0_10] : memref<64x128xf32, #tpu.memory_space<vmem>>, vector<64x128xf32>
      %16 = arith.truncf %15 : vector<64x128xf32> to vector<64x128xbf16>
      %c0_11 = arith.constant 0 : index
      %c0_12 = arith.constant 0 : index
      %17 = vector.load %arg4[%c0_11, %c0_12] : memref<64x128xbf16, #tpu.memory_space<vmem>>, vector<64x128xbf16>
      tpu.vector_store %arg4[%c0_11, %c0_12], %16 {strides = array<i32>} : memref<64x128xbf16, #tpu.memory_space<vmem>>, vector<64x128xbf16>,
      %cst_13 = arith.constant dense<0.000000e+00> : vector<128xf32>
      %18 = vector.multi_reduction <add>, %15, %cst_13 [0] : vector<64x128xf32> to vector<128xf32>
      %19 = vector.shape_cast %18 : vector<128xf32> to vector<1x128xf32>
      %20 = arith.mulf %15, %15 : vector<64x128xf32>
      %cst_14 = arith.constant dense<0.000000e+00> : vector<128xf32>
      %21 = vector.multi_reduction <add>, %20, %cst_14 [0] : vector<64x128xf32> to vector<128xf32>
      %22 = vector.shape_cast %21 : vector<128xf32> to vector<1x128xf32>
      %23 = tpu.iota {dimensions = array<i32: 0>} : vector<8x128xi32>
      %c0_i32_15 = arith.constant 0 : i32
      %24 = vector.broadcast %c0_i32_15 : i32 to vector<8x128xi32>
      %25 = arith.cmpi eq, %23, %24 : vector<8x128xi32>
      %cst_16 = arith.constant 0.000000e+00 : f32
      %26 = vector.shape_cast %19 : vector<1x128xf32> to vector<1x128xf32>
      %27 = vector.broadcast %26 : vector<1x128xf32> to vector<8x128xf32>
      %28 = vector.broadcast %cst_16 : f32 to vector<8x128xf32>
      %29 = arith.select %25, %27, %28 : vector<8x128xi1>, vector<8x128xf32>
      %c1_i32 = arith.constant 1 : i32
      %30 = vector.broadcast %c1_i32 : i32 to vector<8x128xi32>
      %31 = arith.cmpi eq, %23, %30 : vector<8x128xi32>
      %cst_17 = arith.constant 0.000000e+00 : f32
      %32 = vector.shape_cast %22 : vector<1x128xf32> to vector<1x128xf32>
      %33 = vector.broadcast %32 : vector<1x128xf32> to vector<8x128xf32>
      %34 = vector.broadcast %cst_17 : f32 to vector<8x128xf32>
      %35 = arith.select %31, %33, %34 : vector<8x128xi1>, vector<8x128xf32>
      %36 = arith.addf %29, %35 : vector<8x128xf32>
      %37 = vector.shape_cast %36 : vector<8x128xf32> to vector<1x8x128xf32>
      %c0_18 = arith.constant 0 : index
      %c0_19 = arith.constant 0 : index
      %c0_20 = arith.constant 0 : index
      %38 = vector.load %arg5[%c0_18, %c0_19, %c0_20] : memref<1x8x128xf32, #tpu.memory_space<vmem>>, vector<1x8x128xf32>
      tpu.vector_store %arg5[%c0_18, %c0_19, %c0_20], %37 {strides = array<i32>} : memref<1x8x128xf32, #tpu.memory_space<vmem>>, vector<1x8x128xf32>,
    } else {
    }
    return
  }
  func.func @transform_0(%arg0: i32, %arg1: i32) -> (i32, i32) {
    %c0_i32 = arith.constant 0 : i32
    return %arg0, %arg1 : i32, i32
  }
  func.func @transform_1(%arg0: i32, %arg1: i32) -> (i32, i32) {
    %c0_i32 = arith.constant 0 : i32
    %c0_i32_0 = arith.constant 0 : i32
    %c0_i32_1 = arith.constant 0 : i32
    return %c0_i32, %c0_i32_0 : i32, i32
  }
  func.func @transform_2(%arg0: i32, %arg1: i32) -> (i32, i32) {
    %c0_i32 = arith.constant 0 : i32
    %c0_i32_0 = arith.constant 0 : i32
    return %arg0, %c0_i32 : i32, i32
  }
  func.func @transform_3(%arg0: i32, %arg1: i32) -> (i32, i32, i32) {
    %c0_i32 = arith.constant 0 : i32
    %c0_i32_0 = arith.constant 0 : i32
    %c0_i32_1 = arith.constant 0 : i32
    return %arg0, %c0_i32, %c0_i32_0 : i32, i32, i32
  }
}

</mosaic_0001>

<bundles_post_ra>
// kernel: tpu_custom_call.1
= control target key start
LH: loop header
LB: loop body
LE: loop exit
PB: predicated region body
PF: predicated region fallthrough
CT: control target
= control target key end

     0   :  { %9 = vsyncpa [#allocation4], 0  ;;  %s1384_s0 = inlined_call_operand.hbm [shape: bf16[128,128], index: 0, kind: input, shape index: {}]   ;;  %s1385_s1 = inlined_call_operand.hbm [shape: bf16[128,128], index: 1, kind: input, shape index: {}]   ;;  %s1386_s2 = inlined_call_operand.hbm [shape: bf16[128,128], index: 2, kind: output, shape index: {0}]   ;;  %s1387_s3 = inlined_call_operand.hbm [shape: f32[2,8,128], index: 3, kind: output, shape index: {1}]  }
   0x1   :  { %11 = vsyncpa [#allocation4 + $0x1], 0 }
   0x2   :  { %12 = vsyncpa [#allocation7], 0 }
   0x3   :  { %13 = vsyncpa [#allocation5], 0 }
   0x4   :  { %15 = vsyncpa [#allocation5 + $0x1], 0 }
   0x5   :  { %16 = vsyncpa [#allocation10], 0 }
   0x6   :  { %18 = vsyncpa [#allocation10 + $0x1], 0  ;;  %s1112_s12 = smov 0   ;;  %s1114_s13 = smov 0  }
   0x7   :  { %s1116_s14 = smov 0   ;;  %s1118_s15 = smov 0  }
   0x8   :  { %s1120_s16 = smov 0   ;;  %s1122_s17 = smov 0  }
   0x9 LB: > { %s687_s18 = sadd.s32 4294967295, %s1082_s17   ;;  %s688_s19 = sadd.s32 4294967294, %s1082_s17   ;;  %s1082_s17 = sphi %s1122_s17, %s24_s17   ;;  %s1078_s16 = sphi %s1120_s16, %s1411_s16   ;;  %s1074_s15 = sphi %s1118_s15, %s1410_s15   ;;  %s1070_s14 = sphi %s1116_s14, %s1409_s14   ;;  %s1066_s13 = sphi %s1114_s13, %s1408_s13   ;;  %s1062_s12 = sphi %s1112_s12, %s1407_s12  }
   0xa   : > { %p58_p0 = scmp.ne.s32.totalorder %s1066_s13, %s1062_s12  ;;  %p1146_p1 = scmp.eq.s32.totalorder %s687_s18, 0 }
   0xb   : > { %p1150_p2 = scmp.eq.s32.totalorder %s687_s18, 1  ;;  %p109_p3 = scmp.eq.s32.totalorder %s688_s19, 1 }
   0xc   : > { %s1392_s20 = scalar_select %p1146_p1, 1, 0 }
   0xd   : > { %s1393_s21 = scalar_select %p1150_p2, 1, 0 }
   0xe   : > { %p1156_p4 = por %p1146_p1, %p58_p0  ;;  %p689_p5 = scmp.ge.s32.totalorder %s1082_s17, 1 }
   0xf   : > { %p1161_p6 = por %p109_p3, %p58_p0  ;;  %p142_p7 = scmp.lt.s32.totalorder %s1082_s17, 3 }
  0x10   : > { %s1394_s22 = scalar_select %p1156_p4, 1, 0 }
  0x11   : > { %s1395_s23 = scalar_select %p1161_p6, 1, 0 }
  0x12   : > { %p1166_p8 = pnand %p689_p5, %p142_p7  ;;  %s1084_s25 = smov [#allocation6]  }
  0x13   : > { %s154_s26 = sshll.u32 %s1084_s25, 4  ;;  %s36_s28 = sadd.s32 1, %s1078_s16  ;;  %s155_s26 = int_to_ptr.vmem [resolvable:$true] %s154_s26 }
  0x14   : > { %s1396_s24 = scalar_select %p1166_p8, 1, 0 }
  0x15   : > { %p822_p9 = pneg %p1166_p8  ;;  %s906_s4 = scalar_lea.hbm %s1385_s1, 1024 }
  0x16   : > { %p907_p12 = scmp.ne.s32.totalorder %s1385_s1, %s906_s4  ;;  %p913_p5 = scmp.lt.u32.totalorder %s906_s4, %s1385_s1 }
  0x17   : > { %p1175_p11 = pnand %p822_p9, %p1146_p1 }
  0x19   : > { %p908_p13 = pneg %p1175_p11 }
  0x1b   : > { %p909_p0 = pnand %p908_p13, %p907_p12 }
  0x1d   : > { %p910_p3 = pneg %p909_p0 }
  0x1f   : > { %p915_p7 = pnand %p913_p5, %p910_p3 }
  0x21   : > { %918 = shalt.err (!%p915_p7)
}
  0x22   : > { %s919_s9 = scalar_lea.vmem %s155_s26, 1024  ;;  %p927_p1 = scmp.lt.s32.totalorder %s155_s26, %s155_s26 }
  0x23   : > { %p920_p9 = scmp.ne.s32.totalorder %s155_s26, %s919_s9  ;;  %p928_p4 = scmp.lt.s32.totalorder %s919_s9, %s919_s9 }
  0x25   : > { %p922_p10 = pnand %p920_p9, %p908_p13  ;;  %p929_p8 = por %p928_p4, %p927_p1 }
  0x27   : > { %p923_p6 = pneg %p922_p10 }
  0x29   : > { %p930_p2 = pnand %p929_p8, %p923_p6 }
  0x2b   : > { %933 = shalt.err (!%p930_p2)
}
  0x2c   : > { %s1085_s10 = smov 64   ;;  %s1086_s11 = smov 4  }
  0x2d   : > { %825 = dma.hbm_to_vmem [thread:$0]  (!%p1175_p11), %s1385_s1, 1024, %s155_s26, [#allocation7], %s1085_s10, %s1085_s10, %s1086_s11  }
  0x2e   : > { %p38_p1 = scmp.ge.s32.totalorder %s36_s28, 2  ;;  %s45_s25 = sadd.s32 1, %s1070_s14 }
  0x2f   : > { %p52_p2 = scmp.ne.s32.totalorder %s1070_s14, %s1066_s13  ;;  %p53_p4 = scmp.eq.s32.totalorder %s1082_s17, 0 }
  0x30   : > { %s1413_s28 = smov (%p38_p1, %s36_s28), 0  ;;  %p1399_p8 = scmp.ne.s32.totalorder %s1393_s21, 0 }
  0x31   : > { %p1205_p6 = por %p53_p4, %p52_p2  ;;  %s40_s30 = ssub.s32 %s1078_s16, %s1413_s28 }
  0x32   : > { %p1211_p10 = por %p1399_p8, %p52_p2  ;;  %p838_p12 = scmp.lt.s32.totalorder %s1082_s17, 2 }
  0x33   : > { %p43_p11 = scmp.eq.s32.totalorder %s40_s30, 0  ;;  %s168_s26 = sand.u32 1, %s1070_s14  }
  0x34   : > { %s692_s4 = sshll.u32 %s168_s26, 5  ;;  %s727_s6 = sshll.u32 %s1078_s16, 9 }
  0x35   : > { %s1220_s5 = scalar_select %p43_p11, %s1070_s14, %s45_s25  }
  0x36   : > { %s1226_s9 = scalar_lea.hbm %s1384_s0, %s727_s6  ;;  %s172_s21 = scalar_lea.vmem [#allocation3], %s692_s4 }
  0x37   : > { %s180_s18 = sshll.u32 %s172_s21, 4  ;;  %p1232_p13 = pnand %p838_p12, %p1205_p6  ;;  %s1228_s18 = int_to_ptr.vmem [resolvable:$true] %s180_s18 }
  0x38   : > { %s1236_s25 = scalar_lea.sflag [#allocation4], %s168_s26  ;;  %s934_s30 = scalar_lea.hbm %s1226_s9, 512 }
  0x39   : > { %p935_p0 = scmp.ne.s32.totalorder %s1226_s9, %s934_s30  ;;  %p936_p3 = pneg %p1232_p13 }
  0x3a   : > { %s939_s29 = scalar_lea.hbm %s1384_s0, 1024  ;;  %p940_p9 = scmp.lt.u32.totalorder %s1226_s9, %s1384_s0 }
  0x3b   : > { %p937_p5 = pnand %p936_p3, %p935_p0  ;;  %p941_p1 = scmp.lt.u32.totalorder %s939_s29, %s934_s30 }
  0x3c   : > { %p943_p4 = scmp.lt.u32.totalorder %s934_s30, %s1226_s9 }
  0x3d   : > { %p938_p7 = pneg %p937_p5  ;;  %p942_p2 = por %p941_p1, %p940_p9 }
  0x3f   : > { %p944_p6 = por %p943_p4, %p942_p2 }
  0x41   : > { %p945_p8 = pnand %p944_p6, %p938_p7 }
  0x43   : > { %948 = shalt.err (!%p945_p8)
}
  0x44   : > { %s949_s26 = scalar_lea.vmem %s1228_s18, 512  ;;  %s1087_s21 = smov [#allocation3]  }
  0x45   : > { %p950_p12 = scmp.ne.s32.totalorder %s1228_s18, %s949_s26  ;;  %s954_s4 = sshll.u32 %s1087_s21, 4  ;;  %s955_s4 = int_to_ptr.vmem [resolvable:$false] %s954_s4 }
  0x46   : > { %s956_s6 = scalar_lea.vmem %s955_s4, 1024  ;;  %p957_p5 = scmp.lt.s32.totalorder %s1228_s18, %s955_s4 }
  0x47   : > { %p952_p11 = pnand %p950_p12, %p936_p3  ;;  %p958_p9 = scmp.lt.s32.totalorder %s956_s6, %s949_s26 }
  0x49   : > { %p953_p0 = pneg %p952_p11  ;;  %p959_p1 = por %p958_p9, %p957_p5 }
  0x4b   : > { %p960_p2 = pnand %p959_p1, %p953_p0 }
  0x4d   : > { %963 = shalt.err (!%p960_p2)
}
  0x4e   : > { %829 = dma.hbm_to_vmem [thread:$0]  (!%p1232_p13), %s1226_s9, 512, %s1228_s18, %s1236_s25, %s1085_s10, %s1085_s10, %s1086_s11  }
  0x4f   : > { %p1402_p3 = scmp.ne.s32.totalorder %s1396_s24, 0 }
  0x50   : > { %s1270_s30 = sand.u32 (!%p1402_p3), 1, %s1066_s13   ;;  %p1403_p7 = scmp.ne.s32.totalorder (!%p1402_p3), %s1394_s22, 0 }
  0x51   : > { %192 = sbr.rel (%p1402_p3) target bundleno = 396 (0x18c), region = 28  ;;  %s696_s29 = sshll.u32 (!%p1402_p3), %s1270_s30, 5 }
  0x52   : > { %s195_s7 = scalar_lea.sflag (!%p1402_p3), [#allocation4], %s1270_s30  ;;  %s1276_s19 = scalar_lea.vmem (!%p1402_p3), [#allocation3], %s696_s29 }
  0x58   : > { %1045 = dma.done.wait (%p1403_p7), %s195_s7, 512  }
  0x59   : > { %1047 = vsyncadd (%p1403_p7), %s195_s7, 4294966784  ;;  %p1404_p13 = scmp.ne.s32.totalorder %s1392_s20, 0 }
  0x5b   : > { %1049 = dma.done.wait (%p1404_p13), [#allocation7], 1024  }
  0x5c   : > { %1051 = vsyncadd (%p1404_p13), [#allocation7], 4294966272  ;;  %v894_v0 = vld [vmem:[#allocation6] sm:$0xff]   ;;  %v895_v1 = vld [vmem:[#allocation6 + $0x8] sm:$0xff]   ;;  %s222_s20 = scalar_lea.vmem [#allocation8], %s696_s29  ;;  %s736_s24 = sshll.u32 %s1074_s15, 9 }
  0x5d   : > { %772 = vmatprep.subr.bf16.mxu0 %v894_v0  ;;  %796 = vmatprep.subr.bf16.mxu1 %v894_v0  ;;  %v896_v2 = vld [vmem:[#allocation6 + $0x10] sm:$0xff]   ;;  %v897_v3 = vld [vmem:[#allocation6 + $0x18] sm:$0xff]   ;;  %v902_v4 = vld [vmem:[%s1276_s19] sm:$0xff]   ;;  %s547_s22 = sshll.u32 %s222_s20, 4  ;;  %s1301_s9 = scalar_lea.hbm %s1386_s2, %s736_s24  ;;  %s1295_s22 = int_to_ptr.vmem [resolvable:$true] %s547_s22 }
  0x5e   : > { %773 = vmatpush3.bf16.msra.mxu0 %v894_v0  ;;  %804 = vmatpush3.bf16.msra.mxu1 %v894_v0  ;;  %v904_v5 = vld [vmem:[%s1276_s19 + $0x10] sm:$0xff]   ;;  %v898_v6 = vld [vmem:[#allocation6 + $0x20] sm:$0xff]   ;;  %v899_v7 = vld [vmem:[#allocation6 + $0x28] sm:$0xff]   ;;  %s529_s18 = scalar_lea.sflag [#allocation5], %s1270_s30  ;;  %s964_s25 = scalar_lea.vmem %s1295_s22, 512 }
  0x5f   : > { %774 = vmatprep.subr.bf16.mxu0 %v895_v1  ;;  %797 = vmatprep.subr.bf16.mxu1 %v895_v1  ;;  %v900_v8 = vld [vmem:[#allocation6 + $0x30] sm:$0xff]   ;;  %v901_v9 = vld [vmem:[#allocation6 + $0x38] sm:$0xff]   ;;  %v903_v10 = vld [vmem:[%s1276_s19 + $0x8] sm:$0xff]   ;;  %p965_p4 = scmp.ne.s32.totalorder %s1295_s22, %s964_s25  ;;  %s1088_s8 = smov [#allocation8]  }
  0x60   : > { %788 = vmatprep.mubr.bf16.mxu0 %v902_v4  ;;  %792 = vmatprep.mubr.bf16.mxu1 %v904_v5  ;;  %v905_v11 = vld [vmem:[%s1276_s19 + $0x18] sm:$0xff]   ;;  %s968_s26 = sshll.u32 %s1088_s8, 4  ;;  %s969_s26 = int_to_ptr.vmem [resolvable:$false] %s968_s26 }
  0x61   : > { %p966_p6 = pnand %p965_p4, %p1211_p10  ;;  %s970_s21 = scalar_lea.vmem %s969_s26, 1024 }
  0x62   : > { %775 = vmatpush3.bf16.msra.mxu0 %v895_v1  ;;  %805 = vmatpush3.bf16.msra.mxu1 %v895_v1  ;;  %p971_p12 = scmp.lt.s32.totalorder %s1295_s22, %s969_s26  ;;  %p972_p11 = scmp.lt.s32.totalorder %s970_s21, %s964_s25 }
  0x63   : > { %776 = vmatprep.subr.bf16.mxu0 %v896_v2  ;;  %798 = vmatprep.subr.bf16.mxu1 %v896_v2  ;;  %p967_p8 = pneg %p966_p6 }
  0x64   : > { %p973_p0 = por %p972_p11, %p971_p12 }
  0x66   : > { %777 = vmatpush3.bf16.msra.mxu0 %v896_v2  ;;  %806 = vmatpush3.bf16.msra.mxu1 %v896_v2  ;;  %p974_p5 = pnand %p973_p0, %p967_p8 }
  0x67   : > { %778 = vmatprep.subr.bf16.mxu0 %v897_v3  ;;  %799 = vmatprep.subr.bf16.mxu1 %v897_v3 }
  0x6a   : > { %779 = vmatpush3.bf16.msra.mxu0 %v897_v3  ;;  %807 = vmatpush3.bf16.msra.mxu1 %v897_v3 }
  0x6b   : > { %780 = vmatprep.subr.bf16.mxu0 %v898_v6  ;;  %800 = vmatprep.subr.bf16.mxu1 %v898_v6 }
  0x6e   : > { %781 = vmatpush3.bf16.msra.mxu0 %v898_v6  ;;  %808 = vmatpush3.bf16.msra.mxu1 %v898_v6 }
  0x6f   : > { %782 = vmatprep.subr.bf16.mxu0 %v899_v7  ;;  %801 = vmatprep.subr.bf16.mxu1 %v899_v7 }
  0x72   : > { %783 = vmatpush3.bf16.msra.mxu0 %v899_v7  ;;  %809 = vmatpush3.bf16.msra.mxu1 %v899_v7 }
  0x73   : > { %784 = vmatprep.subr.bf16.mxu0 %v900_v8  ;;  %802 = vmatprep.subr.bf16.mxu1 %v900_v8 }
  0x76   : > { %785 = vmatpush3.bf16.msra.mxu0 %v900_v8  ;;  %810 = vmatpush3.bf16.msra.mxu1 %v900_v8 }
  0x77   : > { %786 = vmatprep.subr.bf16.mxu0 %v901_v9  ;;  %803 = vmatprep.subr.bf16.mxu1 %v901_v9 }
  0x7a   : > { %787 = vmatpush3.bf16.msra.mxu0 %v901_v9  ;;  %811 = vmatpush3.bf16.msra.mxu1 %v901_v9 }
  0x7d   : > { %789 = vmatmul.mubr.bf16.vlgmr.msra.gmra.mrb[0].mxu0 %v903_v10  ;;  %793 = vmatmul.mubr.bf16.vlgmr.msra.gmra.mrb[0].mxu1 %v905_v11 }
 0x150   : > { %v790_v12 = vpop.f32.mrb[0].mxu0  ;;  %v1292_v13 = vpop.f32.mrb[0].mxu1 }
 0x151   : > { %v388_v14 = vpop.f32.mrb[1].mxu0  ;;  %v404_v15 = vpop.f32.mrb[1].mxu1  ;;  %v501_v27 = vmul.f32 %v790_v12, %v790_v12 }
 0x152   : > { %v791_v16 = vpop.f32.mrb[2].mxu0  ;;  %v795_v17 = vpop.f32.mrb[2].mxu1  ;;  %v499_v18 = vmul.f32 %v388_v14, %v388_v14 }
 0x153   : > { %v745_v19 = vpack.c.bf16 %v791_v16, %v790_v12  ;;  %v391_v20 = vpop.f32.mrb[3].mxu0  ;;  %v755_v21 = vpack.c.bf16 %v795_v17, %v1292_v13  ;;  %v407_v22 = vpop.f32.mrb[3].mxu1 }
 0x154   : > { %v740_v23 = vpack.c.bf16 %v391_v20, %v388_v14  ;;  %v486_v24 = vadd.f32 %v391_v20, %v388_v14  ;;  %v500_v25 = vmul.f32 %v391_v20, %v391_v20  ;;  %v750_v26 = vpack.c.bf16 %v407_v22, %v404_v15 }
 0x155   : > { %757 = vst [vmem:[%s222_s20 + $0x8] sm:$0xff] %v745_v19   ;;  %759 = vst [vmem:[%s222_s20 + $0x18] sm:$0xff] %v755_v21  }
 0x156   : > { %741 = vst [vmem:[%s222_s20] sm:$0xff] %v740_v23   ;;  %v487_v28 = vadd.f32 %v790_v12, %v486_v24  ;;  %v507_v29 = vadd.f32 %v500_v25, %v499_v18  ;;  %758 = vst [vmem:[%s222_s20 + $0x10] sm:$0xff] %v750_v26  }
 0x157   : > { %977 = shalt.err (!%p974_p5)
}
 0x158   : > { %s978_s4 = scalar_lea.hbm %s1301_s9, 512  ;;  %s982_s7 = scalar_lea.hbm %s1386_s2, 1024 }
 0x159   : > { %p979_p9 = scmp.ne.s32.totalorder %s1301_s9, %s978_s4  ;;  %p983_p3 = scmp.lt.u32.totalorder %s1301_s9, %s1386_s2 }
 0x15a   : > { %p984_p7 = scmp.lt.u32.totalorder %s982_s7, %s978_s4  ;;  %p986_p4 = scmp.lt.u32.totalorder %s978_s4, %s1301_s9 }
 0x15b   : > { %p980_p1 = pnand %p979_p9, %p1211_p10 }
 0x15c   : > { %p985_p13 = por %p984_p7, %p983_p3 }
 0x15d   : > { %p981_p2 = pneg %p980_p1 }
 0x15e   : > { %p987_p6 = por %p986_p4, %p985_p13 }
 0x160   : > { %p988_p8 = pnand %p987_p6, %p981_p2 }
 0x162   : > { %991 = shalt.err (!%p988_p8)
}
 0x163   : > { %s1089_s24 = smov 64   ;;  %s1090_s10 = smov 4   ;;  %v502_v30 = vmul.f32 %v791_v16, %v791_v16  ;;  %v508_v31 = vadd.f32 %v507_v29, %v501_v27  ;;  %v488_v32 = vadd.f32 %v791_v16, %v487_v28  ;;  %v503_v33 = vmul.f32 %v404_v15, %v404_v15 }
 0x164   : > { %818 = dma.vmem_to_hbm [thread:$0]  (%p1211_p10), %s1295_s22, 512, %s1301_s9, %s529_s18, %s1089_s24, %s1089_s24, %s1090_s10   ;;  %v504_v38 = vmul.f32 %v407_v22, %v407_v22  ;;  %v505_v39 = vmul.f32 %v1292_v13, %v1292_v13  ;;  %v506_v42 = vmul.f32 %v795_v17, %v795_v17  ;;  %v520_v49 = vlaneseq }
 0x165   : > { %v489_v34 = vadd.f32 %v488_v32, %v404_v15  ;;  %v509_v35 = vadd.f32 %v508_v31, %v502_v30  ;;  %s699_s22 = sshll.u32 %s1270_s30, 3  ;;  %s724_s11 = sshll.u32 %s1074_s15, 7 }
 0x166   : > { %v521_v54 = vshrl.u32 %v520_v49, 7  ;;  %s229_s9 = scalar_lea.vmem [#allocation9], %s699_s22  ;;  %s1335_s26 = scalar_lea.hbm %s1387_s3, %s724_s11 }
 0x167   : > { %v510_v36 = vadd.f32 %v509_v35, %v503_v33  ;;  %v490_v37 = vadd.f32 %v489_v34, %v407_v22  ;;  %s563_s18 = sshll.u32 %s229_s9, 4  ;;  %s534_s21 = scalar_lea.sflag [#allocation10], %s1270_s30  ;;  %s1337_s18 = int_to_ptr.vmem [resolvable:$true] %s563_s18 }
 0x168   : > { %vm522_vm0 = vcmp.eq.s32.totalorder %v521_v54, 0  ;;  %vm524_vm1 = vcmp.eq.s32.totalorder %v521_v54, 1  ;;  %s992_s4 = scalar_lea.vmem %s1337_s18, 128  ;;  %s1091_s15 = smov [#allocation9]  }
 0x169   : > { %v491_v40 = vadd.f32 %v1292_v13, %v490_v37  ;;  %v511_v41 = vadd.f32 %v510_v36, %v504_v38  ;;  %p993_p12 = scmp.ne.s32.totalorder %s1337_s18, %s992_s4  ;;  %s996_s6 = sshll.u32 %s1091_s15, 4  ;;  %s997_s6 = int_to_ptr.vmem [resolvable:$false] %s996_s6 }
 0x16a   : > { %s998_s29 = scalar_lea.vmem %s997_s6, 256  ;;  %p999_p5 = scmp.lt.s32.totalorder %s1337_s18, %s997_s6 }
 0x16b   : > { %v492_v43 = vadd.f32 %v795_v17, %v491_v40  ;;  %v512_v44 = vadd.f32 %v511_v41, %v505_v39  ;;  %p994_p11 = pnand %p993_p12, %p1211_p10  ;;  %p1000_p9 = scmp.lt.s32.totalorder %s998_s29, %s992_s4 }
 0x16d   : > { %v493_v45 = vrot.slane %v492_v43, 4  ;;  %v513_v46 = vadd.f32 %v512_v44, %v506_v42  ;;  %p995_p0 = pneg %p994_p11  ;;  %p1001_p1 = por %p1000_p9, %p999_p5 }
 0x16f   : > { %v494_v47 = vadd.f32 %v493_v45, %v492_v43  ;;  %v514_v48 = vrot.slane %v513_v46, 4  ;;  %p1002_p2 = pnand %p1001_p1, %p995_p0 }
 0x171   : > { %v495_v50 = vrot.slane %v494_v47, 2  ;;  %v515_v51 = vadd.f32 %v514_v48, %v513_v46 }
 0x173   : > { %v496_v52 = vadd.f32 %v495_v50, %v494_v47  ;;  %v516_v53 = vrot.slane %v515_v51, 2 }
 0x175   : > { %v497_v55 = vrot.slane %v496_v52, 1  ;;  %v517_v56 = vadd.f32 %v516_v53, %v515_v51 }
 0x177   : > { %v498_v57 = vadd.f32 %v497_v55, %v496_v52  ;;  %v518_v58 = vrot.slane %v517_v56, 1 }
 0x179   : > { %v519_v59 = vadd.f32 %v518_v58, %v517_v56  ;;  %v523_v60 = vsel %vm522_vm0, %v498_v57, 0.0 }
 0x17b   : > { %v525_v61 = vsel %vm524_vm1, %v519_v59, 0.0 }
 0x17c   : > { %v526_v62 = vadd.f32 %v525_v61, %v523_v60 }
 0x17e   : > { %527 = vst [vmem:[%s229_s9] sm:$0xff] %v526_v62 }
 0x17f   : > { %1005 = shalt.err (!%p1002_p2)
}
 0x180   : > { %s1006_s30 = scalar_lea.hbm %s1335_s26, 128  ;;  %s1010_s20 = scalar_lea.hbm %s1387_s3, 256 }
 0x181   : > { %p1007_p3 = scmp.ne.s32.totalorder %s1335_s26, %s1006_s30  ;;  %p1011_p4 = scmp.lt.u32.totalorder %s1335_s26, %s1387_s3 }
 0x182   : > { %p1012_p6 = scmp.lt.u32.totalorder %s1010_s20, %s1006_s30  ;;  %p1014_p12 = scmp.lt.u32.totalorder %s1006_s30, %s1335_s26 }
 0x183   : > { %p1008_p7 = pnand %p1007_p3, %p1211_p10 }
 0x184   : > { %p1013_p8 = por %p1012_p6, %p1011_p4 }
 0x185   : > { %p1009_p13 = pneg %p1008_p7 }
 0x186   : > { %p1015_p11 = por %p1014_p12, %p1013_p8 }
 0x188   : > { %p1016_p0 = pnand %p1015_p11, %p1009_p13 }
 0x18a   : > { %1019 = shalt.err (!%p1016_p0)
}
 0x18b   : > { %819 = dma.vmem_to_hbm [thread:$0]  (%p1211_p10), %s1337_s18, 128, %s1335_s26, %s534_s21  }
 0x18c PF: > { %s575_s22 = sand.u32 1, %s1062_s12   ;;  %p1405_p5 = scmp.ne.s32.totalorder %s1395_s23, 0 }
 0x18d   : > { %p1406_p9 = scmp.ge.s32.totalorder %s1082_s17, 2  ;;  %s576_s11 = scalar_lea.sflag [#allocation5], %s575_s22 }
 0x18f   : > { %p831_p1 = pnand %p1406_p9, %p1405_p5 }
 0x191   : > { %1053 = dma.done.wait (!%p831_p1), %s576_s11, 512  }
 0x192   : > { %1055 = vsyncadd (!%p831_p1), %s576_s11, 4294966784  ;;  %s585_s9 = scalar_lea.sflag [#allocation10], %s575_s22 }
 0x193   : > { %1057 = dma.done.wait (!%p831_p1), %s585_s9, 128  }
 0x194   : > { %1059 = vsyncadd (!%p831_p1), %s585_s9, 4294967168  ;;  %s24_s17 = sadd.s32 1, %s1082_s17   ;;  %s1407_s12 = smov %s1066_s13 }
 0x195   : > { %p21_p2 = scmp.ge.s32.totalorder %s24_s17, 4   ;;  %s1408_s13 = smov %s1070_s14 }
 0x196   : > { %s1409_s14 = smov %s1220_s5  ;;  %s1410_s15 = smov %s1078_s16 }
 0x197   : > { %s1411_s16 = smov %s1413_s28  ;;  %23 = sbr.rel (!%p21_p2) target bundleno = 9 (0x9), region = 103 }
 0x19e   :  { %590 = vsyncpa [#allocation4], 1 }
 0x19f   :  { %592 = vsyncpa [#allocation4 + $0x1], 1 }
 0x1a0   :  { %593 = vsyncpa [#allocation7], 1 }
 0x1a1   :  { %594 = vsyncpa [#allocation5], 1 }
 0x1a2   :  { %596 = vsyncpa [#allocation5 + $0x1], 1 }
 0x1a3   :  { %597 = vsyncpa [#allocation10], 1 }
 0x1a4   :  { %599 = vsyncpa [#allocation10 + $0x1], 1 }

</bundles_post_ra>
